<compile_context>
chip_gen: v7x
topology: tpu7x:2x2x1
jax: 0.10.0
libtpu: 0.0.40
codegen_flags: <defaults>
</compile_context>

<pallas_src>
import jax
import jax.numpy as jnp
from jax.experimental import pallas as pl
from jax.experimental.pallas import tpu as pltpu


def siamese_kernel(p1_ref, p2_ref,
                   w1_ref, b1_ref,
                   w2_ref, b2_ref,
                   w3_ref, b3_ref,
                   w4_ref, b4_ref,
                   out_ref,
                   x_ref):
    bf16 = jnp.bfloat16
    f32 = jnp.float32
    tb = x_ref.shape[0]

    # Fused concat -> single K=256 LHS.  Pad lanes [100,128) and [228,256)
    # must be exactly zero (W1's matching rows are zero, but 0 * inf/NaN in
    # the MXU would still produce NaN), and they are rewritten every step so
    # correctness does not depend on which core ran program_id == 0.
    zpad = jnp.zeros((tb, 28), f32)
    x_ref[:, 0:100] = p1_ref[...]
    x_ref[:, 100:128] = zpad
    x_ref[:, 128:228] = p2_ref[...]
    x_ref[:, 228:256] = zpad

    # fc1 + ReLU (one K=256 pass; padded output cols stay exactly zero)
    h = jnp.dot(x_ref[...].astype(bf16), w1_ref[...], preferred_element_type=f32)
    h = jnp.maximum(h + b1_ref[...], 0.0)                        # (TB, 512)

    # fc2 + ReLU
    h = jnp.dot(h.astype(bf16), w2_ref[...], preferred_element_type=f32)
    h = jnp.maximum(h + b2_ref[...], 0.0)                        # (TB, 256)

    # fc3 + ReLU
    h = jnp.dot(h.astype(bf16), w3_ref[...], preferred_element_type=f32)
    h = jnp.maximum(h + b3_ref[...], 0.0)                        # (TB, 128)

    # fc4 + ReLU
    h = jnp.dot(h.astype(bf16), w4_ref[...], preferred_element_type=f32)
    h = jnp.maximum(h + b4_ref[...], 0.0)                        # (TB, 128); lanes 0,1 valid

    # 2-class softmax as a numerically-stable sigmoid of the logit gap:
    #   d = l0 - l1,  e = exp(-|d|) <= 1  (never overflows),
    #   p1 = e/(1+e) if d>=0 else 1/(1+e),  p0 = 1 - p1.
    d = h[:, 0:1] - h[:, 1:2]
    e = jnp.exp(-jnp.abs(d))
    inv = pl.reciprocal(1.0 + e, approx=True)     # EUP; argument bounded in [1, 2]
    prob1 = jnp.where(d >= 0.0, e, 1.0) * inv     # softmax prob of class 1
    prob0 = 1.0 - prob1
    # Single (TB, 2) store instead of two 1-lane masked column writes.
    out_ref[...] = jnp.concatenate([prob0, prob1], axis=-1).astype(out_ref.dtype)


def _round_up(x, m):
    return ((x + m - 1) // m) * m


def siamese_forward(pos1, pos2, params, *, batch_tile=1024):
    """pos1, pos2: (B, 100) float32.  Returns (B, 2) softmax probabilities."""
    B, F = pos1.shape
    assert pos2.shape == (B, F) and F == 100

    w1, b1, w2, b2, w3, b3, w4, b4 = params

    # Batch tile: as large as possible (amortizes ~0.35 us/step pipeline
    # overhead and the resident-weight RHS pushes), but once B > 16 split
    # into an even number of >=2 grid steps so ("parallel",) shards the grid
    # across both v7x TensorCores.  VMEM stays a few MiB even at TB=1024.
    if B <= 16:
        TB = B
    else:
        n_steps = max(2, pl.cdiv(B, batch_tile))
        n_steps += n_steps % 2                      # even step count
        TB = _round_up(pl.cdiv(B, n_steps), 8)
    grid = (pl.cdiv(B, TB),)

    act = lambda feat: pl.BlockSpec((TB, feat), lambda i: (i, 0))
    # Constant block index -> weights/biases fetched once, resident in VMEM.
    res = lambda arr: pl.BlockSpec(arr.shape, lambda i: (0, 0))

    flops = 2 * B * (200 * 400 + 400 * 200 + 200 * 100 + 100 * 2)
    bytes_accessed = (pos1.nbytes + pos2.nbytes + B * 2 * 4
                      + sum(int(p.nbytes) for p in params))
    cost = pl.CostEstimate(flops=flops, transcendentals=B,
                           bytes_accessed=bytes_accessed)

    return pl.pallas_call(
        siamese_kernel,
        out_shape=jax.ShapeDtypeStruct((B, 2), jnp.float32),
        grid_spec=pltpu.PrefetchScalarGridSpec(
            num_scalar_prefetch=0,
            grid=grid,
            in_specs=[act(100), act(100),
                      res(w1), res(b1),
                      res(w2), res(b2),
                      res(w3), res(b3),
                      res(w4), res(b4)],
            out_specs=pl.BlockSpec((TB, 2), lambda i: (i, 0)),
            scratch_shapes=[pltpu.VMEM((TB, 256), jnp.float32)],
        ),
        compiler_params=pltpu.CompilerParams(
            dimension_semantics=("parallel",)),
        cost_estimate=cost,
    )(pos1, pos2, w1, b1, w2, b2, w3, b3, w4, b4)


def init_params(key):
    """PyTorch-style Linear init, stored as (in, out), lane-padded, bf16 weights.

    fc1 is stored as a single (256, 512) matrix whose rows [0,100) multiply
    pos1 and rows [128,228) multiply pos2; all pad rows/cols are zero, so
    padded activation lanes stay exactly zero through every ReLU.
    """
    def linear(k, fan_in, fan_out):
        kw, kb = jax.random.split(k)
        bound = 1.0 / (fan_in ** 0.5)
        w = jax.random.uniform(kw, (fan_in, fan_out), jnp.float32, -bound, bound)
        b = jax.random.uniform(kb, (1, fan_out), jnp.float32, -bound, bound)
        return w, b

    def pad_to(a, shape):
        out = jnp.zeros(shape, a.dtype)
        return out.at[:a.shape[0], :a.shape[1]].set(a)

    k1, k2, k3, k4 = jax.random.split(key, 4)
    w1, b1 = linear(k1, 200, 400)     # logical fc1
    w2, b2 = linear(k2, 400, 200)     # logical fc2
    w3, b3 = linear(k3, 200, 100)     # logical fc3
    w4, b4 = linear(k4, 100, 2)       # logical fc4

    bf16 = jnp.bfloat16
    w1p = jnp.zeros((256, 512), jnp.float32)
    w1p = w1p.at[0:100, 0:400].set(w1[:100])      # pos1 half of fc1
    w1p = w1p.at[128:228, 0:400].set(w1[100:])    # pos2 half of fc1
    w1p = w1p.astype(bf16)
    b1p = pad_to(b1, (1, 512))
    w2p = pad_to(w2, (512, 256)).astype(bf16)
    b2p = pad_to(b2, (1, 256))
    w3p = pad_to(w3, (256, 128)).astype(bf16)
    b3p = pad_to(b3, (1, 128))
    w4p = pad_to(w4, (128, 128)).astype(bf16)
    b4p = pad_to(b4, (1, 128))
    return (w1p, b1p, w2p, b2p, w3p, b3p, w4p, b4p)


def siamese_reference(pos1, pos2, params):
    """Pure-JAX reference with the same bf16 weights / f32 accumulation."""
    w1, b1, w2, b2, w3, b3, w4, b4 = params
    bf16, f32 = jnp.bfloat16, jnp.float32
    B = pos1.shape[0]
    x = jnp.zeros((B, 256), f32)
    x = x.at[:, 0:100].set(pos1)
    x = x.at[:, 128:228].set(pos2)
    h = jnp.maximum(jnp.dot(x.astype(bf16), w1, preferred_element_type=f32) + b1, 0.0)
    h = jnp.maximum(jnp.dot(h.astype(bf16), w2, preferred_element_type=f32) + b2, 0.0)
    h = jnp.maximum(jnp.dot(h.astype(bf16), w3, preferred_element_type=f32) + b3, 0.0)
    h = jnp.maximum(jnp.dot(h.astype(bf16), w4, preferred_element_type=f32) + b4, 0.0)
    return jax.nn.softmax(h[:, :2], axis=-1)


if __name__ == "__main__":
    key = jax.random.PRNGKey(0)
    k_params, k1, k2 = jax.random.split(key, 3)

    params = init_params(k_params)

    B = 8
    pos1 = jax.random.normal(k1, (B, 100), jnp.float32)
    pos2 = jax.random.normal(k2, (B, 100), jnp.float32)

    out = siamese_forward(pos1, pos2, params)
    out = jax.block_until_ready(out)

    ref = siamese_reference(pos1, pos2, params)

    assert out.shape == (B, 2)
    assert bool(jnp.all(jnp.isfinite(out)))
    assert bool(jnp.allclose(jnp.sum(out, axis=-1), 1.0, atol=1e-3))
    assert bool(jnp.allclose(out, ref, atol=2e-3, rtol=1e-3))

    print("KERNEL_OK")
</pallas_src>

<mosaic_0001>
module attributes {stable_mosaic.version = 11 : i64} {
  func.func @siamese_kernel(%arg0: i32, %arg1: memref<8x100xf32, #tpu.memory_space<vmem>>, %arg2: memref<8x100xf32, #tpu.memory_space<vmem>>, %arg3: memref<256x512xbf16, #tpu.memory_space<vmem>>, %arg4: memref<1x512xf32, #tpu.memory_space<vmem>>, %arg5: memref<512x256xbf16, #tpu.memory_space<vmem>>, %arg6: memref<1x256xf32, #tpu.memory_space<vmem>>, %arg7: memref<256x128xbf16, #tpu.memory_space<vmem>>, %arg8: memref<1x128xf32, #tpu.memory_space<vmem>>, %arg9: memref<128x128xbf16, #tpu.memory_space<vmem>>, %arg10: memref<1x128xf32, #tpu.memory_space<vmem>>, %arg11: memref<8x2xf32, #tpu.memory_space<vmem>>, %arg12: memref<8x256xf32, #tpu.memory_space<vmem>>) attributes {dimension_semantics = [#tpu.dimension_semantics<parallel>], iteration_bounds = array<i64: 1>, scalar_prefetch = 0 : i64, scratch_operands = 1 : i64, tpu.core_type = #tpu.core_type<tc>, window_params = [{transform_indices = @transform_0, window_bounds = array<i64: 8, 100>}, {transform_indices = @transform_1, window_bounds = array<i64: 8, 100>}, {pipeline_mode = #tpu.pipeline_mode<synchronous>, transform_indices = @transform_2, window_bounds = array<i64: 256, 512>}, {pipeline_mode = #tpu.pipeline_mode<synchronous>, transform_indices = @transform_3, window_bounds = array<i64: 1, 512>}, {pipeline_mode = #tpu.pipeline_mode<synchronous>, transform_indices = @transform_4, window_bounds = array<i64: 512, 256>}, {pipeline_mode = #tpu.pipeline_mode<synchronous>, transform_indices = @transform_5, window_bounds = array<i64: 1, 256>}, {pipeline_mode = #tpu.pipeline_mode<synchronous>, transform_indices = @transform_6, window_bounds = array<i64: 256, 128>}, {pipeline_mode = #tpu.pipeline_mode<synchronous>, transform_indices = @transform_7, window_bounds = array<i64: 1, 128>}, {pipeline_mode = #tpu.pipeline_mode<synchronous>, transform_indices = @transform_8, window_bounds = array<i64: 128, 128>}, {pipeline_mode = #tpu.pipeline_mode<synchronous>, transform_indices = @transform_9, window_bounds = array<i64: 1, 128>}, {transform_indices = @transform_10, window_bounds = array<i64: 8, 2>}]} {
    %cst = arith.constant 0.000000e+00 : f32
    %0 = vector.broadcast %cst : f32 to vector<8x28xf32>
    %c0 = arith.constant 0 : index
    %c0_0 = arith.constant 0 : index
    %1 = vector.load %arg1[%c0, %c0_0] : memref<8x100xf32, #tpu.memory_space<vmem>>, vector<8x100xf32>
    %c0_1 = arith.constant 0 : index
    %c0_2 = arith.constant 0 : index
    %2 = vector.load %arg12[%c0_1, %c0_2] : memref<8x256xf32, #tpu.memory_space<vmem>>, vector<8x100xf32>
    tpu.vector_store %arg12[%c0_1, %c0_2], %1 {strides = array<i32>} : memref<8x256xf32, #tpu.memory_space<vmem>>, vector<8x100xf32>,
    %c0_3 = arith.constant 0 : index
    %c100 = arith.constant 100 : index
    %3 = vector.load %arg12[%c0_3, %c100] : memref<8x256xf32, #tpu.memory_space<vmem>>, vector<8x28xf32>
    tpu.vector_store %arg12[%c0_3, %c100], %0 {strides = array<i32>} : memref<8x256xf32, #tpu.memory_space<vmem>>, vector<8x28xf32>,
    %c0_4 = arith.constant 0 : index
    %c0_5 = arith.constant 0 : index
    %4 = vector.load %arg2[%c0_4, %c0_5] : memref<8x100xf32, #tpu.memory_space<vmem>>, vector<8x100xf32>
    %c0_6 = arith.constant 0 : index
    %c128 = arith.constant 128 : index
    %5 = vector.load %arg12[%c0_6, %c128] : memref<8x256xf32, #tpu.memory_space<vmem>>, vector<8x100xf32>
    tpu.vector_store %arg12[%c0_6, %c128], %4 {strides = array<i32>} : memref<8x256xf32, #tpu.memory_space<vmem>>, vector<8x100xf32>,
    %c0_7 = arith.constant 0 : index
    %c228 = arith.constant 228 : index
    %6 = vector.load %arg12[%c0_7, %c228] : memref<8x256xf32, #tpu.memory_space<vmem>>, vector<8x28xf32>
    tpu.vector_store %arg12[%c0_7, %c228], %0 {strides = array<i32>} : memref<8x256xf32, #tpu.memory_space<vmem>>, vector<8x28xf32>,
    %c0_8 = arith.constant 0 : index
    %c0_9 = arith.constant 0 : index
    %7 = vector.load %arg12[%c0_8, %c0_9] : memref<8x256xf32, #tpu.memory_space<vmem>>, vector<8x256xf32>
    %8 = arith.truncf %7 : vector<8x256xf32> to vector<8x256xbf16>
    %c0_10 = arith.constant 0 : index
    %c0_11 = arith.constant 0 : index
    %9 = vector.load %arg3[%c0_10, %c0_11] : memref<256x512xbf16, #tpu.memory_space<vmem>>, vector<256x512xbf16>
    %cst_12 = arith.constant dense<0.000000e+00> : vector<8x512xf32>
    %10 = tpu.matmul %8, %9, %cst_12 {dimension_numbers = #tpu.dot_dimension_numbers<[1], [0], [0], [1], [0, 0, 1, 1], [], []>} : vector<8x256xbf16>, vector<256x512xbf16>, vector<8x512xf32> -> vector<8x512xf32>
    %c0_13 = arith.constant 0 : index
    %c0_14 = arith.constant 0 : index
    %11 = vector.load %arg4[%c0_13, %c0_14] : memref<1x512xf32, #tpu.memory_space<vmem>>, vector<1x512xf32>
    %12 = vector.broadcast %11 : vector<1x512xf32> to vector<8x512xf32>
    %13 = arith.addf %10, %12 : vector<8x512xf32>
    %cst_15 = arith.constant 0.000000e+00 : f32
    %14 = vector.broadcast %cst_15 : f32 to vector<8x512xf32>
    %15 = arith.maximumf %13, %14 : vector<8x512xf32>
    %16 = arith.truncf %15 : vector<8x512xf32> to vector<8x512xbf16>
    %c0_16 = arith.constant 0 : index
    %c0_17 = arith.constant 0 : index
    %17 = vector.load %arg5[%c0_16, %c0_17] : memref<512x256xbf16, #tpu.memory_space<vmem>>, vector<512x256xbf16>
    %cst_18 = arith.constant dense<0.000000e+00> : vector<8x256xf32>
    %18 = tpu.matmul %16, %17, %cst_18 {dimension_numbers = #tpu.dot_dimension_numbers<[1], [0], [0], [1], [0, 0, 1, 1], [], []>} : vector<8x512xbf16>, vector<512x256xbf16>, vector<8x256xf32> -> vector<8x256xf32>
    %c0_19 = arith.constant 0 : index
    %c0_20 = arith.constant 0 : index
    %19 = vector.load %arg6[%c0_19, %c0_20] : memref<1x256xf32, #tpu.memory_space<vmem>>, vector<1x256xf32>
    %20 = vector.broadcast %19 : vector<1x256xf32> to vector<8x256xf32>
    %21 = arith.addf %18, %20 : vector<8x256xf32>
    %cst_21 = arith.constant 0.000000e+00 : f32
    %22 = vector.broadcast %cst_21 : f32 to vector<8x256xf32>
    %23 = arith.maximumf %21, %22 : vector<8x256xf32>
    %24 = arith.truncf %23 : vector<8x256xf32> to vector<8x256xbf16>
    %c0_22 = arith.constant 0 : index
    %c0_23 = arith.constant 0 : index
    %25 = vector.load %arg7[%c0_22, %c0_23] : memref<256x128xbf16, #tpu.memory_space<vmem>>, vector<256x128xbf16>
    %cst_24 = arith.constant dense<0.000000e+00> : vector<8x128xf32>
    %26 = tpu.matmul %24, %25, %cst_24 {dimension_numbers = #tpu.dot_dimension_numbers<[1], [0], [0], [1], [0, 0, 1, 1], [], []>} : vector<8x256xbf16>, vector<256x128xbf16>, vector<8x128xf32> -> vector<8x128xf32>
    %c0_25 = arith.constant 0 : index
    %c0_26 = arith.constant 0 : index
    %27 = vector.load %arg8[%c0_25, %c0_26] : memref<1x128xf32, #tpu.memory_space<vmem>>, vector<1x128xf32>
    %28 = vector.broadcast %27 : vector<1x128xf32> to vector<8x128xf32>
    %29 = arith.addf %26, %28 : vector<8x128xf32>
    %cst_27 = arith.constant 0.000000e+00 : f32
    %30 = vector.broadcast %cst_27 : f32 to vector<8x128xf32>
    %31 = arith.maximumf %29, %30 : vector<8x128xf32>
    %32 = arith.truncf %31 : vector<8x128xf32> to vector<8x128xbf16>
    %c0_28 = arith.constant 0 : index
    %c0_29 = arith.constant 0 : index
    %33 = vector.load %arg9[%c0_28, %c0_29] : memref<128x128xbf16, #tpu.memory_space<vmem>>, vector<128x128xbf16>
    %cst_30 = arith.constant dense<0.000000e+00> : vector<8x128xf32>
    %34 = tpu.matmul %32, %33, %cst_30 {dimension_numbers = #tpu.dot_dimension_numbers<[1], [0], [0], [1], [0, 0, 1, 1], [], []>} : vector<8x128xbf16>, vector<128x128xbf16>, vector<8x128xf32> -> vector<8x128xf32>
    %c0_31 = arith.constant 0 : index
    %c0_32 = arith.constant 0 : index
    %35 = vector.load %arg10[%c0_31, %c0_32] : memref<1x128xf32, #tpu.memory_space<vmem>>, vector<1x128xf32>
    %36 = vector.broadcast %35 : vector<1x128xf32> to vector<8x128xf32>
    %37 = arith.addf %34, %36 : vector<8x128xf32>
    %cst_33 = arith.constant 0.000000e+00 : f32
    %38 = vector.broadcast %cst_33 : f32 to vector<8x128xf32>
    %39 = arith.maximumf %37, %38 : vector<8x128xf32>
    %40 = vector.extract_strided_slice %39 {offsets = [0, 0], sizes = [8, 1], strides = [1, 1]} : vector<8x128xf32> to vector<8x1xf32>
    %41 = vector.extract_strided_slice %39 {offsets = [0, 1], sizes = [8, 1], strides = [1, 1]} : vector<8x128xf32> to vector<8x1xf32>
    %42 = arith.subf %40, %41 : vector<8x1xf32>
    %43 = math.absf %42 : vector<8x1xf32>
    %cst_34 = arith.constant 0.000000e+00 : f32
    %44 = vector.broadcast %cst_34 : f32 to vector<8x1xf32>
    %45 = arith.subf %44, %43 : vector<8x1xf32>
    %46 = math.exp %45 : vector<8x1xf32>
    %cst_35 = arith.constant 1.000000e+00 : f32
    %47 = vector.broadcast %cst_35 : f32 to vector<8x1xf32>
    %48 = arith.addf %47, %46 : vector<8x1xf32>
    %49 = tpu.reciprocal %48 {approx = true} : vector<8x1xf32> -> vector<8x1xf32>
    %cst_36 = arith.constant 0.000000e+00 : f32
    %50 = vector.broadcast %cst_36 : f32 to vector<8x1xf32>
    %51 = arith.cmpf oge, %42, %50 : vector<8x1xf32>
    %cst_37 = arith.constant 1.000000e+00 : f32
    %52 = vector.broadcast %cst_37 : f32 to vector<8x1xf32>
    %53 = arith.select %51, %46, %52 : vector<8x1xi1>, vector<8x1xf32>
    %54 = arith.mulf %53, %49 : vector<8x1xf32>
    %cst_38 = arith.constant 1.000000e+00 : f32
    %55 = vector.broadcast %cst_38 : f32 to vector<8x1xf32>
    %56 = arith.subf %55, %54 : vector<8x1xf32>
    %57 = tpu.concatenate %56, %54 in 1 : vector<8x1xf32>, vector<8x1xf32> -> vector<8x2xf32>
    %c0_39 = arith.constant 0 : index
    %c0_40 = arith.constant 0 : index
    %58 = vector.load %arg11[%c0_39, %c0_40] : memref<8x2xf32, #tpu.memory_space<vmem>>, vector<8x2xf32>
    tpu.vector_store %arg11[%c0_39, %c0_40], %57 {strides = array<i32>} : memref<8x2xf32, #tpu.memory_space<vmem>>, vector<8x2xf32>,
    return
  }
  func.func @transform_0(%arg0: i32) -> (i32, i32) {
    %c0_i32 = arith.constant 0 : i32
    %c0_i32_0 = arith.constant 0 : i32
    return %arg0, %c0_i32 : i32, i32
  }
  func.func @transform_1(%arg0: i32) -> (i32, i32) {
    %c0_i32 = arith.constant 0 : i32
    %c0_i32_0 = arith.constant 0 : i32
    return %arg0, %c0_i32 : i32, i32
  }
  func.func @transform_2(%arg0: i32) -> (i32, i32) {
    %c0_i32 = arith.constant 0 : i32
    %c0_i32_0 = arith.constant 0 : i32
    %c0_i32_1 = arith.constant 0 : i32
    return %c0_i32, %c0_i32_0 : i32, i32
  }
  func.func @transform_3(%arg0: i32) -> (i32, i32) {
    %c0_i32 = arith.constant 0 : i32
    %c0_i32_0 = arith.constant 0 : i32
    %c0_i32_1 = arith.constant 0 : i32
    return %c0_i32, %c0_i32_0 : i32, i32
  }
  func.func @transform_4(%arg0: i32) -> (i32, i32) {
    %c0_i32 = arith.constant 0 : i32
    %c0_i32_0 = arith.constant 0 : i32
    %c0_i32_1 = arith.constant 0 : i32
    return %c0_i32, %c0_i32_0 : i32, i32
  }
  func.func @transform_5(%arg0: i32) -> (i32, i32) {
    %c0_i32 = arith.constant 0 : i32
    %c0_i32_0 = arith.constant 0 : i32
    %c0_i32_1 = arith.constant 0 : i32
    return %c0_i32, %c0_i32_0 : i32, i32
  }
  func.func @transform_6(%arg0: i32) -> (i32, i32) {
    %c0_i32 = arith.constant 0 : i32
    %c0_i32_0 = arith.constant 0 : i32
    %c0_i32_1 = arith.constant 0 : i32
    return %c0_i32, %c0_i32_0 : i32, i32
  }
  func.func @transform_7(%arg0: i32) -> (i32, i32) {
    %c0_i32 = arith.constant 0 : i32
    %c0_i32_0 = arith.constant 0 : i32
    %c0_i32_1 = arith.constant 0 : i32
    return %c0_i32, %c0_i32_0 : i32, i32
  }
  func.func @transform_8(%arg0: i32) -> (i32, i32) {
    %c0_i32 = arith.constant 0 : i32
    %c0_i32_0 = arith.constant 0 : i32
    %c0_i32_1 = arith.constant 0 : i32
    return %c0_i32, %c0_i32_0 : i32, i32
  }
  func.func @transform_9(%arg0: i32) -> (i32, i32) {
    %c0_i32 = arith.constant 0 : i32
    %c0_i32_0 = arith.constant 0 : i32
    %c0_i32_1 = arith.constant 0 : i32
    return %c0_i32, %c0_i32_0 : i32, i32
  }
  func.func @transform_10(%arg0: i32) -> (i32, i32) {
    %c0_i32 = arith.constant 0 : i32
    %c0_i32_0 = arith.constant 0 : i32
    return %arg0, %c0_i32 : i32, i32
  }
}

</mosaic_0001>

<bundles_post_ra>
// kernel: tpu_custom_call.1
= control target key start
LH: loop header
LB: loop body
LE: loop exit
PB: predicated region body
PF: predicated region fallthrough
CT: control target
= control target key end

     0   :  { %15 = vsyncpa [#allocation4], 0  ;;  %s2214_s0 = inlined_call_operand.hbm [shape: f32[8,100], index: 0, kind: input, shape index: {}]   ;;  %s2215_s1 = inlined_call_operand.hbm [shape: f32[8,100], index: 1, kind: input, shape index: {}]   ;;  %s2216_s2 = inlined_call_operand.hbm [shape: bf16[256,512], index: 2, kind: input, shape index: {}]   ;;  %s2217_s3 = inlined_call_operand.vmem [shape: f32[1,512], index: 3, kind: input, shape index: {}]   ;;  %s2218_s4 = inlined_call_operand.hbm [shape: bf16[512,256], index: 4, kind: input, shape index: {}]   ;;  %s2219_s5 = inlined_call_operand.vmem [shape: f32[1,256], index: 5, kind: input, shape index: {}]   ;;  %s2220_s6 = inlined_call_operand.hbm [shape: bf16[256,128], index: 6, kind: input, shape index: {}]   ;;  %s2221_s7 = inlined_call_operand.vmem [shape: f32[1,128], index: 7, kind: input, shape index: {}]   ;;  %s2222_s8 = inlined_call_operand.hbm [shape: bf16[128,128], index: 8, kind: input, shape index: {}]   ;;  %s2223_s9 = inlined_call_operand.vmem [shape: f32[1,128], index: 9, kind: input, shape index: {}]   ;;  %s2224_s10 = inlined_call_operand.vmem [shape: f32[8,2], index: 10, kind: output, shape index: {}]  }
   0x1   :  { %16 = vsyncpa [#allocation6], 0 }
   0x2   :  { %17 = vsyncpa [#allocation9], 0 }
   0x3   :  { %18 = vsyncpa [#allocation12], 0  ;;  %s2011_s13 = smov [#allocation5]   ;;  %s2012_s15 = smov [#allocation8]  }
   0x4   :  { %s35_s14 = sshll.u32 %s2011_s13, 4  ;;  %s58_s16 = sshll.u32 %s2012_s15, 4  ;;  %s36_s14 = int_to_ptr.vmem [resolvable:$true] %s35_s14  ;;  %s2082_s16 = int_to_ptr.vmem [resolvable:$true] %s58_s16 }
   0x5   :  { %s1871_s19 = scalar_lea.hbm %s2215_s1, 128 }
   0x6   :  { %p1872_p0 = scmp.ne.s32.totalorder %s2215_s1, %s1871_s19  ;;  %p1875_p1 = scmp.lt.u32.totalorder %s1871_s19, %s2215_s1 }
   0x8   :  { %p1877_p2 = pnand %p1875_p1, %p1872_p0 }
   0xa   :  { %1880 = shalt.err (!%p1877_p2)
}
   0xb   :  { %s1881_s24 = scalar_lea.vmem %s36_s14, 128  ;;  %p1886_p4 = scmp.lt.s32.totalorder %s36_s14, %s36_s14 }
   0xc   :  { %p1882_p3 = scmp.ne.s32.totalorder %s36_s14, %s1881_s24  ;;  %p1887_p5 = scmp.lt.s32.totalorder %s1881_s24, %s1881_s24 }
   0xe   :  { %p1888_p6 = por %p1887_p5, %p1886_p4 }
  0x10   :  { %p1889_p7 = pnand %p1888_p6, %p1882_p3 }
  0x12   :  { %1892 = shalt.err (!%p1889_p7)
}
  0x13   :  { %38 = dma.hbm_to_vmem [thread:$0]  %s2215_s1, 128, %s36_s14, [#allocation6]  }
  0x14   :  { %s1893_s29 = scalar_lea.hbm %s2218_s4, 8192 }
  0x15   :  { %p1894_p8 = scmp.ne.s32.totalorder %s2218_s4, %s1893_s29  ;;  %p1897_p9 = scmp.lt.u32.totalorder %s1893_s29, %s2218_s4 }
  0x17   :  { %p1899_p10 = pnand %p1897_p9, %p1894_p8 }
  0x19   :  { %1902 = shalt.err (!%p1899_p10)
}
  0x1a   :  { %s1903_s15 = scalar_lea.vmem %s2082_s16, 8192  ;;  %p1908_p12 = scmp.lt.s32.totalorder %s2082_s16, %s2082_s16 }
  0x1b   :  { %p1904_p11 = scmp.ne.s32.totalorder %s2082_s16, %s1903_s15  ;;  %p1909_p13 = scmp.lt.s32.totalorder %s1903_s15, %s1903_s15 }
  0x1d   :  { %p1910_p0 = por %p1909_p13, %p1908_p12 }
  0x1f   :  { %p1911_p1 = pnand %p1910_p0, %p1904_p11 }
  0x21   :  { %1914 = shalt.err (!%p1911_p1)
}
  0x22   :  { %s2013_s1 = smov 128   ;;  %s2014_s14 = smov 8  }
  0x23   :  { %64 = dma.hbm_to_vmem [thread:$0]  %s2218_s4, 8192, %s2082_s16, [#allocation9], %s2013_s1, %s2013_s1, %s2014_s14  }
  0x24   :  { %s2015_s19 = smov [#allocation3]   ;;  %s2016_s21 = smov [#allocation7]  }
  0x25   :  { %s25_s20 = sshll.u32 %s2015_s19, 4  ;;  %s44_s22 = sshll.u32 %s2016_s21, 4  ;;  %s26_s20 = int_to_ptr.vmem [resolvable:$true] %s25_s20  ;;  %s2113_s22 = int_to_ptr.vmem [resolvable:$true] %s44_s22 }
  0x26   :  { %s1915_s25 = scalar_lea.hbm %s2214_s0, 128 }
  0x27   :  { %p1916_p2 = scmp.ne.s32.totalorder %s2214_s0, %s1915_s25  ;;  %p1919_p3 = scmp.lt.u32.totalorder %s1915_s25, %s2214_s0 }
  0x29   :  { %p1921_p4 = pnand %p1919_p3, %p1916_p2 }
  0x2b   :  { %1924 = shalt.err (!%p1921_p4)
}
  0x2c   :  { %s1925_s4 = scalar_lea.vmem %s26_s20, 128  ;;  %p1930_p6 = scmp.lt.s32.totalorder %s26_s20, %s26_s20 }
  0x2d   :  { %p1926_p5 = scmp.ne.s32.totalorder %s26_s20, %s1925_s4  ;;  %p1931_p7 = scmp.lt.s32.totalorder %s1925_s4, %s1925_s4 }
  0x2f   :  { %p1932_p8 = por %p1931_p7, %p1930_p6 }
  0x31   :  { %p1933_p9 = pnand %p1932_p8, %p1926_p5 }
  0x33   :  { %1936 = shalt.err (!%p1933_p9)
}
  0x34   :  { %28 = dma.hbm_to_vmem [thread:$0]  %s2214_s0, 128, %s26_s20, [#allocation4]  }
  0x35   :  { %s1937_s13 = scalar_lea.hbm %s2216_s2, 8192 }
  0x36   :  { %p1938_p10 = scmp.ne.s32.totalorder %s2216_s2, %s1937_s13  ;;  %p1941_p11 = scmp.lt.u32.totalorder %s1937_s13, %s2216_s2 }
  0x38   :  { %p1943_p12 = pnand %p1941_p11, %p1938_p10 }
  0x3a   :  { %1946 = shalt.err (!%p1943_p12)
}
  0x3b   :  { %s1947_s18 = scalar_lea.vmem %s2113_s22, 8192  ;;  %p1952_p0 = scmp.lt.s32.totalorder %s2113_s22, %s2113_s22 }
  0x3c   :  { %p1948_p13 = scmp.ne.s32.totalorder %s2113_s22, %s1947_s18  ;;  %p1953_p1 = scmp.lt.s32.totalorder %s1947_s18, %s1947_s18 }
  0x3e   :  { %p1954_p2 = por %p1953_p1, %p1952_p0 }
  0x40   :  { %p1955_p3 = pnand %p1954_p2, %p1948_p13 }
  0x42   :  { %1958 = shalt.err (!%p1955_p3)
}
  0x43   :  { %s2017_s0 = smov 256   ;;  %s2018_s19 = smov 16  }
  0x44   :  { %50 = dma.hbm_to_vmem [thread:$0]  %s2216_s2, 8192, %s2113_s22, [#allocation6], %s2017_s0, %s2017_s0, %s2018_s19  }
  0x45   :  { %s2019_s23 = smov [#allocation10]   ;;  %s1959_s27 = scalar_lea.hbm %s2220_s6, 2048 }
  0x46   :  { %s72_s24 = sshll.u32 %s2019_s23, 4  ;;  %p1960_p4 = scmp.ne.s32.totalorder %s2220_s6, %s1959_s27  ;;  %s73_s24 = int_to_ptr.vmem [resolvable:$true] %s72_s24 }
  0x47   :  { %p1963_p5 = scmp.lt.u32.totalorder %s1959_s27, %s2220_s6 }
  0x49   :  { %p1965_p6 = pnand %p1963_p5, %p1960_p4 }
  0x4b   :  { %1968 = shalt.err (!%p1965_p6)
}
  0x4c   :  { %s1969_s30 = scalar_lea.vmem %s73_s24, 2048  ;;  %p1974_p8 = scmp.lt.s32.totalorder %s73_s24, %s73_s24 }
  0x4d   :  { %p1970_p7 = scmp.ne.s32.totalorder %s73_s24, %s1969_s30  ;;  %p1975_p9 = scmp.lt.s32.totalorder %s1969_s30, %s1969_s30 }
  0x4f   :  { %p1976_p10 = por %p1975_p9, %p1974_p8 }
  0x51   :  { %p1977_p11 = pnand %p1976_p10, %p1970_p7 }
  0x53   :  { %1980 = shalt.err (!%p1977_p11)
}
  0x54   :  { %s2020_s2 = smov 64   ;;  %s2021_s22 = smov 4  }
  0x55   :  { %78 = dma.hbm_to_vmem [thread:$0]  %s2220_s6, 2048, %s73_s24, [#allocation9], %s2020_s2, %s2020_s2, %s2021_s22  }
  0x56   :  { %s2022_s13 = smov [#allocation11]   ;;  %s1981_s17 = scalar_lea.hbm %s2222_s8, 1024 }
  0x57   :  { %s86_s15 = sshll.u32 %s2022_s13, 4  ;;  %p1982_p12 = scmp.ne.s32.totalorder %s2222_s8, %s1981_s17  ;;  %s87_s15 = int_to_ptr.vmem [resolvable:$true] %s86_s15 }
  0x58   :  { %p1985_p13 = scmp.lt.u32.totalorder %s1981_s17, %s2222_s8 }
  0x5a   :  { %p1987_p0 = pnand %p1985_p13, %p1982_p12 }
  0x5c   :  { %1990 = shalt.err (!%p1987_p0)
}
  0x5d   :  { %s1991_s21 = scalar_lea.vmem %s87_s15, 1024  ;;  %p1996_p2 = scmp.lt.s32.totalorder %s87_s15, %s87_s15 }
  0x5e   :  { %p1992_p1 = scmp.ne.s32.totalorder %s87_s15, %s1991_s21  ;;  %p1997_p3 = scmp.lt.s32.totalorder %s1991_s21, %s1991_s21 }
  0x60   :  { %p1998_p4 = por %p1997_p3, %p1996_p2 }
  0x62   :  { %p1999_p5 = pnand %p1998_p4, %p1992_p1 }
  0x64   :  { %2002 = shalt.err (!%p1999_p5)
}
  0x65   :  { %92 = dma.hbm_to_vmem [thread:$0]  %s2222_s8, 1024, %s87_s15, [#allocation12], %s2020_s2, %s2020_s2, %s2021_s22  }
  0x66   :  { %2003 = dma.done.wait [#allocation4], 128  }
  0x67   :  { %2004 = vsyncadd [#allocation4], 4294967168 }
  0x68   :  { %2005 = dma.done.wait [#allocation6], 8320  }
  0x69   :  { %2006 = vsyncadd [#allocation6], 4294958976 }
  0x6a   :  { %2007 = dma.done.wait [#allocation9], 10240  }
  0x6b   :  { %2008 = vsyncadd [#allocation9], 4294957056 }
  0x6c   :  { %2009 = dma.done.wait [#allocation12], 1024  }
  0x6d   :  { %2010 = vsyncadd [#allocation12], 4294966272  ;;  %v1651_v0 = vld [vmem:[#allocation7 + $0x4] ss:$16 sps:$4 sm:$0xff]   ;;  %v1653_v1 = vld [vmem:[#allocation7] ss:$16 sps:$4 sm:$0xff]  }
  0x6e   :  { %532 = vmatprep.subr.bf16.mxu0 %v1651_v0  ;;  %v1654_v2 = vld [vmem:[#allocation7 + $0x24] ss:$16 sps:$4 sm:$0xff]   ;;  %v1656_v3 = vld [vmem:[#allocation7 + $0x20] ss:$16 sps:$4 sm:$0xff]   ;;  %vm115_vm0 = vcmask 818176   ;;  %vm117_vm1 = vcmask 1048352  }
  0x6f   :  { %533 = vmatpush1.bf16.msra.mxu0 %v1653_v1  ;;  %v1657_v4 = vld [vmem:[#allocation7 + $0x44] ss:$16 sps:$4 sm:$0xff]   ;;  %v1659_v5 = vld [vmem:[#allocation7 + $0x40] ss:$16 sps:$4 sm:$0xff]   ;;  %v1698_v14 = vld [vmem:[#allocation7 + $0xc] ss:$16 sps:$4 sm:$0xff]  }
  0x70   :  { %534 = vmatprep.subr.bf16.mxu0 %v1654_v2  ;;  %v1660_v6 = vld [vmem:[#allocation7 + $0x64] ss:$16 sps:$4 sm:$0xff]   ;;  %v1662_v7 = vld [vmem:[#allocation7 + $0x60] ss:$16 sps:$4 sm:$0xff]   ;;  %v1701_v16 = vld [vmem:[#allocation7 + $0x8] ss:$16 sps:$4 sm:$0xff]   ;;  %573 = vmatprep.subr.bf16.mxu1 %v1698_v14 }
  0x71   :  { %v1663_v8 = vld [vmem:[#allocation7 + $0x84] ss:$16 sps:$4 sm:$0xff]   ;;  %v1665_v9 = vld [vmem:[#allocation7 + $0x80] ss:$16 sps:$4 sm:$0xff]   ;;  %v119_v17 = vld [vmem:[#allocation5] sm:$0xff]  ;;  %574 = vmatpush1.bf16.msra.mxu1 %v1701_v16  ;;  %v2023_v19 = vmov 0.0  }
  0x72   :  { %v1666_v10 = vld [vmem:[#allocation7 + $0xa4] ss:$16 sps:$4 sm:$0xff]   ;;  %v1668_v11 = vld [vmem:[#allocation7 + $0xa0] ss:$16 sps:$4 sm:$0xff]   ;;  %120 = vst.msk [vmem:[#allocation2 + $0x8] sm:$0xff] %vm115_vm0, %v119_v17  ;;  %vm2024_vm2 = vmmov 0  }
  0x73   :  { %535 = vmatpush1.bf16.msra.mxu0 %v1656_v3  ;;  %v1669_v12 = vld [vmem:[#allocation7 + $0xc4] ss:$16 sps:$4 sm:$0xff]   ;;  %v1671_v13 = vld [vmem:[#allocation7 + $0xc0] ss:$16 sps:$4 sm:$0xff]   ;;  %121 = vst.msk [vmem:[#allocation2 + $0x8] sm:$0xff] %vm117_vm1, %v2023_v19  ;;  %s2025_s29 = smov 127  }
  0x74   :  { %536 = vmatprep.subr.bf16.mxu0 %v1657_v4  ;;  %v1672_v15 = vld [vmem:[#allocation7 + $0xe4] ss:$16 sps:$4 sm:$0xff]   ;;  %v1702_v20 = vld [vmem:[#allocation7 + $0x2c] ss:$16 sps:$4 sm:$0xff]   ;;  %v1704_v21 = vld [vmem:[#allocation7 + $0x28] ss:$16 sps:$4 sm:$0xff]  }
  0x75   :  { %v114_v18 = vld [vmem:[#allocation3] sm:$0xff]  ;;  %v1705_v22 = vld [vmem:[#allocation7 + $0x4c] ss:$16 sps:$4 sm:$0xff]   ;;  %575 = vmatprep.subr.bf16.mxu1 %v1702_v20  ;;  %v1707_v25 = vld [vmem:[#allocation7 + $0x48] ss:$16 sps:$4 sm:$0xff]   ;;  %vm1412_vm4 = vcmask 7168  }
  0x76   :  { %116 = vst.msk [vmem:[#allocation2] sm:$0xff] %vm115_vm0, %v114_v18  ;;  %v1674_v23 = vld [vmem:[#allocation7 + $0xe0] ss:$16 sps:$4 sm:$0xff]   ;;  %v1675_v24 = vld [vmem:[#allocation7 + $0x104] ss:$16 sps:$4 sm:$0xff]   ;;  %576 = vmatpush1.bf16.msra.mxu1 %v1704_v21  ;;  %vm1414_vm5 = vcmask 15360  }
  0x77   :  { %537 = vmatpush1.bf16.msra.mxu0 %v1659_v5  ;;  %118 = vst.msk [vmem:[#allocation2] sm:$0xff] %vm117_vm1, %v2023_v19  ;;  %577 = vmatprep.subr.bf16.mxu1 %v1705_v22  ;;  %v1708_v26 = vld [vmem:[#allocation7 + $0x6c] ss:$16 sps:$4 sm:$0xff]   ;;  %v1677_v27 = vld [vmem:[#allocation7 + $0x100] ss:$16 sps:$4 sm:$0xff]  }
  0x78   :  { %538 = vmatprep.subr.bf16.mxu0 %v1660_v6  ;;  %v1678_v29 = vld [vmem:[#allocation7 + $0x124] ss:$16 sps:$4 sm:$0xff]   ;;  %v1710_v31 = vld [vmem:[#allocation7 + $0x68] ss:$16 sps:$4 sm:$0xff]   ;;  %v1711_v32 = vld [vmem:[#allocation7 + $0x8c] ss:$16 sps:$4 sm:$0xff]  }
  0x79   :  { %v1680_v33 = vld [vmem:[#allocation7 + $0x120] ss:$16 sps:$4 sm:$0xff]   ;;  %v1681_v34 = vld [vmem:[#allocation7 + $0x144] ss:$16 sps:$4 sm:$0xff]   ;;  %v1713_v35 = vld [vmem:[#allocation7 + $0x88] ss:$16 sps:$4 sm:$0xff]  }
  0x7a   :  { %v123_v28 = vld [vmem:[#allocation2 + $0x8] sm:$0xff]  ;;  %578 = vmatpush1.bf16.msra.mxu1 %v1707_v25  ;;  %v1683_v37 = vld [vmem:[#allocation7 + $0x140] ss:$16 sps:$4 sm:$0xff]   ;;  %v1684_v38 = vld [vmem:[#allocation7 + $0x164] ss:$16 sps:$4 sm:$0xff]  }
  0x7b   :  { %539 = vmatpush1.bf16.msra.mxu0 %v1662_v7  ;;  %v125_v30 = vpack.c.bf16 %v123_v28, %v123_v28  ;;  %579 = vmatprep.subr.bf16.mxu1 %v1708_v26  ;;  %v1714_v36 = vld [vmem:[#allocation7 + $0xac] ss:$16 sps:$4 sm:$0xff]   ;;  %v1716_v39 = vld [vmem:[#allocation7 + $0xa8] ss:$16 sps:$4 sm:$0xff]   ;;  %v1686_v41 = vld [vmem:[#allocation7 + $0x160] ss:$16 sps:$4 sm:$0xff]  }
  0x7c   :  { %540 = vmatprep.subr.bf16.mxu0 %v1663_v8  ;;  %v1717_v40 = vld [vmem:[#allocation7 + $0xcc] ss:$16 sps:$4 sm:$0xff]   ;;  %v1687_v42 = vld [vmem:[#allocation7 + $0x184] ss:$16 sps:$4 sm:$0xff]   ;;  %v1719_v43 = vld [vmem:[#allocation7 + $0xc8] ss:$16 sps:$4 sm:$0xff]  }
  0x7d   :  { %564 = vmatprep.mubr.bf16.mxu0 %v125_v30  ;;  %605 = vmatprep.mubr.bf16.mxu1 %v125_v30  ;;  %v1720_v44 = vld [vmem:[#allocation7 + $0xec] ss:$16 sps:$4 sm:$0xff]   ;;  %v1689_v45 = vld [vmem:[#allocation7 + $0x180] ss:$16 sps:$4 sm:$0xff]   ;;  %v1690_v46 = vld [vmem:[#allocation7 + $0x1a4] ss:$16 sps:$4 sm:$0xff]  }
  0x7e   :  { %580 = vmatpush1.bf16.msra.mxu1 %v1710_v31  ;;  %v1722_v47 = vld [vmem:[#allocation7 + $0xe8] ss:$16 sps:$4 sm:$0xff]   ;;  %v1723_v48 = vld [vmem:[#allocation7 + $0x10c] ss:$16 sps:$4 sm:$0xff]   ;;  %v1692_v49 = vld [vmem:[#allocation7 + $0x1a0] ss:$16 sps:$4 sm:$0xff]  }
  0x7f   :  { %541 = vmatpush1.bf16.msra.mxu0 %v1665_v9  ;;  %581 = vmatprep.subr.bf16.mxu1 %v1711_v32  ;;  %v1693_v50 = vld [vmem:[#allocation7 + $0x1c4] ss:$16 sps:$4 sm:$0xff]   ;;  %v1725_v51 = vld [vmem:[#allocation7 + $0x108] ss:$16 sps:$4 sm:$0xff]   ;;  %v1726_v52 = vld [vmem:[#allocation7 + $0x12c] ss:$16 sps:$4 sm:$0xff]  }
  0x80   :  { %542 = vmatprep.subr.bf16.mxu0 %v1666_v10  ;;  %v1695_v53 = vld [vmem:[#allocation7 + $0x1c0] ss:$16 sps:$4 sm:$0xff]   ;;  %v1696_v54 = vld [vmem:[#allocation7 + $0x1e4] ss:$16 sps:$4 sm:$0xff]   ;;  %v1728_v55 = vld [vmem:[#allocation7 + $0x128] ss:$16 sps:$4 sm:$0xff]  }
  0x81   :  { %v1729_v56 = vld [vmem:[#allocation7 + $0x14c] ss:$16 sps:$4 sm:$0xff]   ;;  %v1700_v57 = vld [vmem:[#allocation7 + $0x1e0] ss:$16 sps:$4 sm:$0xff]   ;;  %v1731_v59 = vld [vmem:[#allocation7 + $0x148] ss:$16 sps:$4 sm:$0xff]  }
  0x82   :  { %582 = vmatpush1.bf16.msra.mxu1 %v1713_v35  ;;  %v122_v58 = vld [vmem:[#allocation2] sm:$0xff]  ;;  %v1732_v61 = vld [vmem:[#allocation7 + $0x16c] ss:$16 sps:$4 sm:$0xff]   ;;  %v1734_v63 = vld [vmem:[#allocation7 + $0x168] ss:$16 sps:$4 sm:$0xff]  }
  0x83   :  { %543 = vmatpush1.bf16.msra.mxu0 %v1668_v11  ;;  %583 = vmatprep.subr.bf16.mxu1 %v1714_v36  ;;  %v1749_v60 = vld [vmem:[#allocation8 + $0x4] ss:$8 sps:$4 sm:$0xff]   ;;  %v124_v62 = vpack.c.bf16 %v122_v58, %v122_v58  ;;  %v1747_v0 = vld [vmem:[#allocation8] ss:$8 sps:$4 sm:$0xff]   ;;  %v1752_v1 = vld [vmem:[#allocation8 + $0x14] ss:$8 sps:$4 sm:$0xff]  }
  0x84   :  { %544 = vmatprep.subr.bf16.mxu0 %v1669_v12  ;;  %v1735_v2 = vld [vmem:[#allocation7 + $0x18c] ss:$16 sps:$4 sm:$0xff]   ;;  %v1750_v3 = vld [vmem:[#allocation8 + $0x10] ss:$8 sps:$4 sm:$0xff]   ;;  %v1753_v7 = vld [vmem:[#allocation8 + $0x20] ss:$8 sps:$4 sm:$0xff]  }
  0x85   :  { %v1737_v4 = vld [vmem:[#allocation7 + $0x188] ss:$16 sps:$4 sm:$0xff]   ;;  %v1755_v5 = vld [vmem:[#allocation8 + $0x24] ss:$8 sps:$4 sm:$0xff]   ;;  %v1758_v9 = vld [vmem:[#allocation8 + $0x34] ss:$8 sps:$4 sm:$0xff]  }
  0x86   :  { %584 = vmatpush1.bf16.msra.mxu1 %v1716_v39  ;;  %v1738_v6 = vld [vmem:[#allocation7 + $0x1ac] ss:$16 sps:$4 sm:$0xff]   ;;  %v1740_v8 = vld [vmem:[#allocation7 + $0x1a8] ss:$16 sps:$4 sm:$0xff]  }
  0x87   :  { %545 = vmatpush1.bf16.msra.mxu0 %v1671_v13  ;;  %585 = vmatprep.subr.bf16.mxu1 %v1717_v40  ;;  %v1741_v10 = vld [vmem:[#allocation7 + $0x1cc] ss:$16 sps:$4 sm:$0xff]   ;;  %v1756_v11 = vld [vmem:[#allocation8 + $0x30] ss:$8 sps:$4 sm:$0xff]   ;;  %v1765_v21 = vld [vmem:[#allocation8 + $0x60] ss:$8 sps:$4 sm:$0xff]  }
  0x88   :  { %546 = vmatprep.subr.bf16.mxu0 %v1672_v15  ;;  %v1743_v12 = vld [vmem:[#allocation7 + $0x1c8] ss:$16 sps:$4 sm:$0xff]   ;;  %v1761_v13 = vld [vmem:[#allocation8 + $0x44] ss:$8 sps:$4 sm:$0xff]   ;;  %v1764_v17 = vld [vmem:[#allocation8 + $0x54] ss:$8 sps:$4 sm:$0xff]  }
  0x89   :  { %v1744_v14 = vld [vmem:[#allocation7 + $0x1ec] ss:$16 sps:$4 sm:$0xff]   ;;  %v1759_v15 = vld [vmem:[#allocation8 + $0x40] ss:$8 sps:$4 sm:$0xff]   ;;  %v1762_v18 = vld [vmem:[#allocation8 + $0x50] ss:$8 sps:$4 sm:$0xff]  }
  0x8a   :  { %586 = vmatpush1.bf16.msra.mxu1 %v1719_v43  ;;  %v1746_v16 = vld [vmem:[#allocation7 + $0x1e8] ss:$16 sps:$4 sm:$0xff]   ;;  %v1767_v20 = vld [vmem:[#allocation8 + $0x64] ss:$8 sps:$4 sm:$0xff]   ;;  %v1770_v22 = vld [vmem:[#allocation8 + $0x74] ss:$8 sps:$4 sm:$0xff]  }
  0x8b   :  { %547 = vmatpush1.bf16.msra.mxu0 %v1674_v23  ;;  %587 = vmatprep.subr.bf16.mxu1 %v1720_v44  ;;  %v1768_v23 = vld [vmem:[#allocation8 + $0x70] ss:$8 sps:$4 sm:$0xff]   ;;  %v1771_v25 = vld [vmem:[#allocation8 + $0x80] ss:$8 sps:$4 sm:$0xff]   ;;  %v1776_v26 = vld [vmem:[#allocation8 + $0x94] ss:$8 sps:$4 sm:$0xff]  }
  0x8c   :  { %548 = vmatprep.subr.bf16.mxu0 %v1675_v24  ;;  %v1773_v24 = vld [vmem:[#allocation8 + $0x84] ss:$8 sps:$4 sm:$0xff]   ;;  %v1782_v30 = vld [vmem:[#allocation8 + $0xb4] ss:$8 sps:$4 sm:$0xff]   ;;  %v1780_v31 = vld [vmem:[#allocation8 + $0xb0] ss:$8 sps:$4 sm:$0xff]  }
  0x8d   :  { %v1779_v28 = vld [vmem:[#allocation8 + $0xa4] ss:$8 sps:$4 sm:$0xff]   ;;  %v1786_v35 = vld [vmem:[#allocation8 + $0xd0] ss:$8 sps:$4 sm:$0xff]  }
  0x8e   :  { %588 = vmatpush1.bf16.msra.mxu1 %v1722_v47  ;;  %v1785_v32 = vld [vmem:[#allocation8 + $0xc4] ss:$8 sps:$4 sm:$0xff]   ;;  %v1792_v39 = vld [vmem:[#allocation8 + $0xf0] ss:$8 sps:$4 sm:$0xff]  }
  0x8f   :  { %549 = vmatpush1.bf16.msra.mxu0 %v1677_v27  ;;  %589 = vmatprep.subr.bf16.mxu1 %v1723_v48  ;;  %v1774_v27 = vld [vmem:[#allocation8 + $0x90] ss:$8 sps:$4 sm:$0xff]   ;;  %v1791_v36 = vld [vmem:[#allocation8 + $0xe4] ss:$8 sps:$4 sm:$0xff]  }
  0x90   :  { %550 = vmatprep.subr.bf16.mxu0 %v1678_v29  ;;  %v1777_v29 = vld [vmem:[#allocation8 + $0xa0] ss:$8 sps:$4 sm:$0xff]   ;;  %v1797_v40 = vld [vmem:[#allocation8 + $0x104] ss:$8 sps:$4 sm:$0xff]   ;;  %v1849_v47 = vld [vmem:[#allocation10 + $0x58] sm:$0xff]  }
  0x91   :  { %v1845_v43 = vld [vmem:[#allocation10 + $0x48] sm:$0xff]   ;;  %v1850_v48 = vld [vmem:[#allocation10 + $0x18] sm:$0xff]  }
  0x92   :  { %590 = vmatpush1.bf16.msra.mxu1 %v1725_v51  ;;  %v1846_v44 = vld [vmem:[#allocation10 + $0x8] sm:$0xff]  }
  0x93   :  { %551 = vmatpush1.bf16.msra.mxu0 %v1680_v33  ;;  %591 = vmatprep.subr.bf16.mxu1 %v1726_v52  ;;  %v1783_v33 = vld [vmem:[#allocation8 + $0xc0] ss:$8 sps:$4 sm:$0xff]  }
  0x94   :  { %552 = vmatprep.subr.bf16.mxu0 %v1681_v34  ;;  %v1788_v34 = vld [vmem:[#allocation8 + $0xd4] ss:$8 sps:$4 sm:$0xff]   ;;  %v1853_v51 = vld [vmem:[#allocation10 + $0x68] sm:$0xff]  }
  0x95   :  { %v1854_v52 = vld [vmem:[#allocation10 + $0x28] sm:$0xff]  }
  0x96   :  { %592 = vmatpush1.bf16.msra.mxu1 %v1728_v55 }
  0x97   :  { %553 = vmatpush1.bf16.msra.mxu0 %v1683_v37  ;;  %593 = vmatprep.subr.bf16.mxu1 %v1729_v56  ;;  %v1789_v37 = vld [vmem:[#allocation8 + $0xe0] ss:$8 sps:$4 sm:$0xff]   ;;  %v2176_v56 = vld [vmem:[%s2217_s3] sm:$0xf] }
  0x98   :  { %554 = vmatprep.subr.bf16.mxu0 %v1684_v38  ;;  %v1794_v38 = vld [vmem:[#allocation8 + $0xf4] ss:$8 sps:$4 sm:$0xff]  }
  0x9a   :  { %594 = vmatpush1.bf16.msra.mxu1 %v1731_v59 }
  0x9b   :  { %555 = vmatpush1.bf16.msra.mxu0 %v1686_v41  ;;  %595 = vmatprep.subr.bf16.mxu1 %v1732_v61  ;;  %v1843_v41 = vld [vmem:[#allocation10 + $0x40] sm:$0xff]  }
  0x9c   :  { %556 = vmatprep.subr.bf16.mxu0 %v1687_v42  ;;  %v1844_v42 = vld [vmem:[#allocation10] sm:$0xff]  }
  0x9e   :  { %596 = vmatpush1.bf16.msra.mxu1 %v1734_v63 }
  0x9f   :  { %557 = vmatpush1.bf16.msra.mxu0 %v1689_v45  ;;  %597 = vmatprep.subr.bf16.mxu1 %v1735_v2  ;;  %v1847_v45 = vld [vmem:[#allocation10 + $0x50] sm:$0xff]  }
  0xa0   :  { %558 = vmatprep.subr.bf16.mxu0 %v1690_v46  ;;  %v1848_v46 = vld [vmem:[#allocation10 + $0x10] sm:$0xff]  }
  0xa2   :  { %598 = vmatpush1.bf16.msra.mxu1 %v1737_v4 }
  0xa3   :  { %559 = vmatpush1.bf16.msra.mxu0 %v1692_v49  ;;  %599 = vmatprep.subr.bf16.mxu1 %v1738_v6  ;;  %v1851_v49 = vld [vmem:[#allocation10 + $0x60] sm:$0xff]  }
  0xa4   :  { %560 = vmatprep.subr.bf16.mxu0 %v1693_v50  ;;  %v1852_v50 = vld [vmem:[#allocation10 + $0x20] sm:$0xff]  }
  0xa6   :  { %600 = vmatpush1.bf16.msra.mxu1 %v1740_v8  ;;  %v1798_v8 = vld [vmem:[#allocation8 + $0x110] ss:$8 sps:$4 sm:$0xff]  }
  0xa7   :  { %561 = vmatpush1.bf16.msra.mxu0 %v1695_v53  ;;  %601 = vmatprep.subr.bf16.mxu1 %v1741_v10  ;;  %v192_v53 = vlaneseq  ;;  %v1801_v10 = vld [vmem:[#allocation8 + $0x120] ss:$8 sps:$4 sm:$0xff]  }
  0xa8   :  { %562 = vmatprep.subr.bf16.mxu0 %v1696_v54 }
  0xa9   :  { %v2170_v54 = vshrl.u32 %v192_v53, 7  ;;  %v1856_v53 = vld [vmem:[#allocation10 + $0x30] sm:$0xff]  }
  0xaa   :  { %602 = vmatpush1.bf16.msra.mxu1 %v1743_v12 }
  0xab   :  { %563 = vmatpush1.bf16.msra.mxu0 %v1700_v57  ;;  %603 = vmatprep.subr.bf16.mxu1 %v1744_v14  ;;  %v194_v55 = vsub.s32 0, %v2170_v54  ;;  %v198_v57 = vsub.s32 1, %v2170_v54  ;;  %v206_v12 = vsub.s32 3, %v2170_v54  ;;  %v1809_v14 = vld [vmem:[#allocation8 + $0x144] ss:$8 sps:$4 sm:$0xff]  }
  0xac   :  { %1018 = vmatprep.subr.bf16.mxu0 %v1749_v60 }
  0xad   :  { %v195_v58 = vrot.slane %v2176_v56, %v194_v55  ;;  %v199_v59 = vrot.slane %v2176_v56, %v198_v57 }
  0xae   :  { %565 = vmatmul.mubr.bf16.vlgmr.msra.gmra.mrb[0].mxu0 %v124_v62  ;;  %604 = vmatpush1.bf16.msra.mxu1 %v1746_v16 }
  0xaf   :  { %1019 = vmatpush1.bf16.msra.mxu0 %v1747_v0  ;;  %1578 = vmatprep.subr.bf16.mxu1 %v1843_v41  ;;  %v202_v41 = vsub.s32 2, %v2170_v54  ;;  %v1861_v54 = vld [vmem:[#allocation11 + $0x10] sm:$0xff]  }
  0xb0   :  { %1020 = vmatprep.subr.bf16.mxu0 %v1752_v1 }
  0xb1   :  { %606 = vmatmul.mubr.bf16.vlgmr.msra.gmra.mrb[0].mxu1 %v124_v62 }
  0xb2   :  { %1579 = vmatpush3.bf16.msra.mxu1 %v1844_v42  ;;  %v1836_v42 = vld [vmem:[#allocation8 + $0x1d4] ss:$8 sps:$4 sm:$0xff]  }
  0xb3   :  { %1021 = vmatpush1.bf16.msra.mxu0 %v1750_v3  ;;  %1580 = vmatprep.subr.bf16.mxu1 %v1845_v43  ;;  %v1834_v43 = vld [vmem:[#allocation8 + $0x1d0] ss:$8 sps:$4 sm:$0xff]  }
  0xb4   :  { %1022 = vmatprep.subr.bf16.mxu0 %v1755_v5  ;;  %v1795_v5 = vld [vmem:[#allocation8 + $0x100] ss:$8 sps:$4 sm:$0xff]  }
  0xb6   :  { %1581 = vmatpush3.bf16.msra.mxu1 %v1846_v44  ;;  %v203_v44 = vrot.slane %v2176_v56, %v202_v41 }
  0xb7   :  { %1023 = vmatpush1.bf16.msra.mxu0 %v1753_v7  ;;  %1582 = vmatprep.subr.bf16.mxu1 %v1847_v45  ;;  %v1800_v7 = vld [vmem:[#allocation8 + $0x114] ss:$8 sps:$4 sm:$0xff]   ;;  %v1839_v45 = vld [vmem:[#allocation8 + $0x1e4] ss:$8 sps:$4 sm:$0xff]  }
  0xb8   :  { %1024 = vmatprep.subr.bf16.mxu0 %v1758_v9  ;;  %v1803_v9 = vld [vmem:[#allocation8 + $0x124] ss:$8 sps:$4 sm:$0xff]  }
  0xba   :  { %1583 = vmatpush3.bf16.msra.mxu1 %v1848_v46  ;;  %v1837_v46 = vld [vmem:[#allocation8 + $0x1e0] ss:$8 sps:$4 sm:$0xff]  }
  0xbb   :  { %1025 = vmatpush1.bf16.msra.mxu0 %v1756_v11  ;;  %1584 = vmatprep.subr.bf16.mxu1 %v1849_v47  ;;  %v1806_v11 = vld [vmem:[#allocation8 + $0x134] ss:$8 sps:$4 sm:$0xff]  }
  0xbc   :  { %1026 = vmatprep.subr.bf16.mxu0 %v1761_v13  ;;  %v1804_v13 = vld [vmem:[#allocation8 + $0x130] ss:$8 sps:$4 sm:$0xff]  }
  0xbe   :  { %1585 = vmatpush3.bf16.msra.mxu1 %v1850_v48  ;;  %v1842_v48 = vld [vmem:[#allocation8 + $0x1f4] ss:$8 sps:$4 sm:$0xff]  }
  0xbf   :  { %1027 = vmatpush1.bf16.msra.mxu0 %v1759_v15  ;;  %1586 = vmatprep.subr.bf16.mxu1 %v1851_v49  ;;  %v207_v15 = vrot.slane %v2176_v56, %v206_v12  ;;  %v1840_v49 = vld [vmem:[#allocation8 + $0x1f0] ss:$8 sps:$4 sm:$0xff]  }
  0xc0   :  { %1028 = vmatprep.subr.bf16.mxu0 %v1764_v17  ;;  %v1807_v17 = vld [vmem:[#allocation8 + $0x140] ss:$8 sps:$4 sm:$0xff]   ;;  %v1858_v56 = vld [vmem:[#allocation10 + $0x38] sm:$0xff]  }
  0xc1   :  { %v1866_v12 = vld [vmem:[#allocation11 + $0x38] sm:$0xff]  }
  0xc2   :  { %1587 = vmatpush3.bf16.msra.mxu1 %v1852_v50 }
  0xc3   :  { %1029 = vmatpush1.bf16.msra.mxu0 %v1762_v18  ;;  %1588 = vmatprep.subr.bf16.mxu1 %v1853_v51 }
  0xc4   :  { %1030 = vmatprep.subr.bf16.mxu0 %v1767_v20  ;;  %v1812_v20 = vld [vmem:[#allocation8 + $0x154] ss:$8 sps:$4 sm:$0xff]  }
  0xc6   :  { %1589 = vmatpush3.bf16.msra.mxu1 %v1854_v52  ;;  %v1855_v52 = vld [vmem:[#allocation10 + $0x70] sm:$0xff]  }
  0xc7   :  { %1031 = vmatpush1.bf16.msra.mxu0 %v1765_v21  ;;  %1590 = vmatprep.subr.bf16.mxu1 %v1855_v52 }
  0xc8   :  { %1032 = vmatprep.subr.bf16.mxu0 %v1770_v22 }
  0xca   :  { %1591 = vmatpush3.bf16.msra.mxu1 %v1856_v53 }
  0xcb   :  { %1033 = vmatpush1.bf16.msra.mxu0 %v1768_v23 }
  0xcc   :  { %1034 = vmatprep.subr.bf16.mxu0 %v1773_v24 }
  0xcf   :  { %1035 = vmatpush1.bf16.msra.mxu0 %v1771_v25  ;;  %v1810_v25 = vld [vmem:[#allocation8 + $0x150] ss:$8 sps:$4 sm:$0xff]  }
  0xd0   :  { %1036 = vmatprep.subr.bf16.mxu0 %v1776_v26  ;;  %v1815_v26 = vld [vmem:[#allocation8 + $0x164] ss:$8 sps:$4 sm:$0xff]  }
  0xd3   :  { %1037 = vmatpush1.bf16.msra.mxu0 %v1774_v27 }
  0xd4   :  { %1038 = vmatprep.subr.bf16.mxu0 %v1779_v28  ;;  %v1813_v28 = vld [vmem:[#allocation8 + $0x160] ss:$8 sps:$4 sm:$0xff]  }
  0xd7   :  { %1039 = vmatpush1.bf16.msra.mxu0 %v1777_v29  ;;  %v1818_v29 = vld [vmem:[#allocation8 + $0x174] ss:$8 sps:$4 sm:$0xff]  }
  0xd8   :  { %1040 = vmatprep.subr.bf16.mxu0 %v1782_v30  ;;  %v1816_v30 = vld [vmem:[#allocation8 + $0x170] ss:$8 sps:$4 sm:$0xff]  }
  0xdb   :  { %1041 = vmatpush1.bf16.msra.mxu0 %v1780_v31  ;;  %v1821_v31 = vld [vmem:[#allocation8 + $0x184] ss:$8 sps:$4 sm:$0xff]  }
  0xdc   :  { %1042 = vmatprep.subr.bf16.mxu0 %v1785_v32  ;;  %v1819_v32 = vld [vmem:[#allocation8 + $0x180] ss:$8 sps:$4 sm:$0xff]  }
  0xdf   :  { %1043 = vmatpush1.bf16.msra.mxu0 %v1783_v33  ;;  %v1824_v33 = vld [vmem:[#allocation8 + $0x194] ss:$8 sps:$4 sm:$0xff]  }
  0xe0   :  { %1044 = vmatprep.subr.bf16.mxu0 %v1788_v34  ;;  %v1822_v34 = vld [vmem:[#allocation8 + $0x190] ss:$8 sps:$4 sm:$0xff]  }
  0xe3   :  { %1045 = vmatpush1.bf16.msra.mxu0 %v1786_v35  ;;  %v1827_v35 = vld [vmem:[#allocation8 + $0x1a4] ss:$8 sps:$4 sm:$0xff]  }
  0xe4   :  { %1046 = vmatprep.subr.bf16.mxu0 %v1791_v36  ;;  %v1825_v36 = vld [vmem:[#allocation8 + $0x1a0] ss:$8 sps:$4 sm:$0xff]  }
  0xe7   :  { %1047 = vmatpush1.bf16.msra.mxu0 %v1789_v37  ;;  %v1830_v37 = vld [vmem:[#allocation8 + $0x1b4] ss:$8 sps:$4 sm:$0xff]  }
  0xe8   :  { %1048 = vmatprep.subr.bf16.mxu0 %v1794_v38  ;;  %v1828_v38 = vld [vmem:[#allocation8 + $0x1b0] ss:$8 sps:$4 sm:$0xff]  }
  0xeb   :  { %1049 = vmatpush1.bf16.msra.mxu0 %v1792_v39  ;;  %v1833_v39 = vld [vmem:[#allocation8 + $0x1c4] ss:$8 sps:$4 sm:$0xff]  }
  0xec   :  { %1059 = vmatprep.subr.bf16.mxu0 %v1797_v40  ;;  %v1831_v40 = vld [vmem:[#allocation8 + $0x1c0] ss:$8 sps:$4 sm:$0xff]  }
 0x181   :  { %v566_v60 = vpop.f32.mrb[0].mxu0 }
 0x182   :  { %v567_v61 = vadd.f32 %v566_v60, %v195_v58  ;;  %v568_v62 = vpop.f32.mrb[1].mxu0  ;;  %v1857_v58 = vld [vmem:[#allocation10 + $0x78] sm:$0xff]  }
 0x183   :  { %v569_v63 = vadd.f32 %v568_v62, %v199_v59  ;;  %v570_v0 = vpop.f32.mrb[2].mxu0  ;;  %1592 = vmatprep.subr.bf16.mxu1 %v1857_v58  ;;  %v686_v59 = vld [vmem:[%s2219_s5] sm:$0x3] }
 0x184   :  { %v614_v1 = vmax.f32 %v567_v61, 0.0  ;;  %v571_v2 = vpop.f32.mrb[3].mxu0  ;;  %v607_v16 = vpop.f32.mrb[0].mxu1  ;;  %1593 = vmatpush3.bf16.msra.mxu1 %v1858_v56  ;;  %v691_v60 = vrot.slane %v686_v59, %v194_v55  ;;  %v695_v61 = vrot.slane %v686_v59, %v198_v57  ;;  %v1862_v55 = vld [vmem:[#allocation11 + $0x18] sm:$0xff]   ;;  %v1863_v57 = vld [vmem:[#allocation11 + $0x20] sm:$0xff]  }
 0x185   :  { %v615_v3 = vmax.f32 %v569_v63, 0.0  ;;  %v609_v18 = vpop.f32.mrb[1].mxu1  ;;  %v608_v47 = vadd.f32 %v607_v16, %v203_v44  ;;  %1609 = vmatprep.subr.bf16.mxu1 %v2023_v19 }
 0x186   :  { %v618_v6 = vpack.c.bf16 %v614_v1, %v614_v1  ;;  %v610_v21 = vadd.f32 %v609_v18, %v207_v15  ;;  %v611_v22 = vpop.f32.mrb[2].mxu1 }
 0x187   :  { %v619_v4 = vpack.c.bf16 %v615_v3, %v615_v3  ;;  %v612_v23 = vpop.f32.mrb[3].mxu1  ;;  %v616_v50 = vmax.f32 %v608_v47, 0.0 }
 0x188   :  { %v617_v24 = vmax.f32 %v610_v21, 0.0  ;;  %v1569_v23 = vld [vmem:[%s2223_s9] ss:$0 sm:$0xff] }
 0x189   :  { %1050 = vmatprep.mubr.bf16.mxu0 %v619_v4  ;;  %v620_v51 = vpack.c.bf16 %v616_v50, %v616_v50 }
 0x18a   :  { %1051 = vmatmul.mubr.bf16.vlgmr.msra.gmra.mrb[4].mxu0 %v618_v6  ;;  %v621_v27 = vpack.c.bf16 %v617_v24, %v617_v24 }
 0x18b   :  { %1060 = vmatpush1.bf16.msra.mxu0 %v1795_v5 }
 0x18c   :  { %1061 = vmatprep.subr.bf16.mxu0 %v1800_v7  ;;  %1091 = vmatprep.mubr.bf16.mxu0 %v621_v27  ;;  %v1859_v7 = vld [vmem:[#allocation11] sm:$0xff]  }
 0x18f   :  { %1062 = vmatpush1.bf16.msra.mxu0 %v1798_v8 }
 0x190   :  { %1063 = vmatprep.subr.bf16.mxu0 %v1803_v9  ;;  %v1860_v9 = vld [vmem:[#allocation11 + $0x8] sm:$0xff]  }
 0x193   :  { %1064 = vmatpush1.bf16.msra.mxu0 %v1801_v10  ;;  %v1864_v10 = vld [vmem:[#allocation11 + $0x28] sm:$0xff]  }
 0x194   :  { %1065 = vmatprep.subr.bf16.mxu0 %v1806_v11  ;;  %v1865_v11 = vld [vmem:[#allocation11 + $0x30] sm:$0xff]  }
 0x197   :  { %1066 = vmatpush1.bf16.msra.mxu0 %v1804_v13 }
 0x198   :  { %1067 = vmatprep.subr.bf16.mxu0 %v1809_v14  ;;  %v1552_v14 = vld [vmem:[%s2221_s7] ss:$0 sm:$0xff]  ;;  %s2026_s7 = smov 1  }
 0x19b   :  { %1068 = vmatpush1.bf16.msra.mxu0 %v1807_v17 }
 0x19c   :  { %1069 = vmatprep.subr.bf16.mxu0 %v1812_v20 }
 0x19f   :  { %1070 = vmatpush1.bf16.msra.mxu0 %v1810_v25 }
 0x1a0   :  { %1071 = vmatprep.subr.bf16.mxu0 %v1815_v26 }
 0x1a3   :  { %1072 = vmatpush1.bf16.msra.mxu0 %v1813_v28 }
 0x1a4   :  { %1073 = vmatprep.subr.bf16.mxu0 %v1818_v29 }
 0x1a7   :  { %1074 = vmatpush1.bf16.msra.mxu0 %v1816_v30 }
 0x1a8   :  { %1075 = vmatprep.subr.bf16.mxu0 %v1821_v31 }
 0x1ab   :  { %1076 = vmatpush1.bf16.msra.mxu0 %v1819_v32 }
 0x1ac   :  { %1077 = vmatprep.subr.bf16.mxu0 %v1824_v33 }
 0x1af   :  { %1078 = vmatpush1.bf16.msra.mxu0 %v1822_v34 }
 0x1b0   :  { %1079 = vmatprep.subr.bf16.mxu0 %v1827_v35 }
 0x1b3   :  { %1080 = vmatpush1.bf16.msra.mxu0 %v1825_v36 }
 0x1b4   :  { %1081 = vmatprep.subr.bf16.mxu0 %v1830_v37 }
 0x1b7   :  { %1082 = vmatpush1.bf16.msra.mxu0 %v1828_v38 }
 0x1b8   :  { %1083 = vmatprep.subr.bf16.mxu0 %v1833_v39 }
 0x1bb   :  { %1084 = vmatpush1.bf16.msra.mxu0 %v1831_v40 }
 0x1bc   :  { %1085 = vmatprep.subr.bf16.mxu0 %v1836_v42 }
 0x1bf   :  { %1086 = vmatpush1.bf16.msra.mxu0 %v1834_v43 }
 0x1c0   :  { %1087 = vmatprep.subr.bf16.mxu0 %v1839_v45 }
 0x1c3   :  { %1088 = vmatpush1.bf16.msra.mxu0 %v1837_v46 }
 0x1c4   :  { %1089 = vmatprep.subr.bf16.mxu0 %v1842_v48 }
 0x1c7   :  { %1090 = vmatpush1.bf16.msra.mxu0 %v1840_v49 }
 0x1ca   :  { %1092 = vmatmul.mubr.bf16.vlgmr.msra.gmra.mrb[4].mxu0 %v620_v51 }
 0x29d   :  { %v1093_v62 = vpop.f32.mrb[4].mxu0 }
 0x29e   :  { %v1629_v63 = vadd.f32 %v1093_v62, %v691_v60  ;;  %v1095_v0 = vpop.f32.mrb[5].mxu0 }
 0x29f   :  { %v1630_v1 = vadd.f32 %v1095_v0, %v695_v61  ;;  %v1097_v2 = vpop.f32.mrb[6].mxu0 }
 0x2a0   :  { %v1100_v3 = vmax.f32 %v1629_v63, 0.0  ;;  %v1098_v4 = vpop.f32.mrb[7].mxu0 }
 0x2a1   :  { %v1101_v5 = vmax.f32 %v1630_v1, 0.0 }
 0x2a2   :  { %v1102_v8 = vpack.c.bf16 %v1100_v3, %v1100_v3 }
 0x2a3   :  { %v1103_v6 = vpack.c.bf16 %v1101_v5, %v1101_v5 }
 0x2a5   :  { %1271 = vmatprep.mubr.bf16.mxu1 %v1103_v6 }
 0x2a6   :  { %1272 = vmatmul.mubr.bf16.vlgmr.msra.gmra.mrb[4].mxu1 %v1102_v8 }
 0x2a7   :  { %1610 = vmatpush3.bf16.msra.mxu1 %v1859_v7  ;;  %1625 = vmatprep.mubr.msk.bf16.mxu1 %vm2024_vm2, %v2023_v19 }
 0x2a8   :  { %1611 = vmatprep.subr.bf16.mxu1 %v2023_v19 }
 0x2ab   :  { %1612 = vmatpush3.bf16.msra.mxu1 %v1860_v9 }
 0x2ac   :  { %1613 = vmatprep.subr.bf16.mxu1 %v2023_v19 }
 0x2af   :  { %1614 = vmatpush3.bf16.msra.mxu1 %v1861_v54 }
 0x2b0   :  { %1615 = vmatprep.subr.bf16.mxu1 %v2023_v19 }
 0x2b3   :  { %1616 = vmatpush3.bf16.msra.mxu1 %v1862_v55 }
 0x2b4   :  { %1617 = vmatprep.subr.bf16.mxu1 %v2023_v19 }
 0x2b7   :  { %1618 = vmatpush3.bf16.msra.mxu1 %v1863_v57 }
 0x2b8   :  { %1619 = vmatprep.subr.bf16.mxu1 %v2023_v19 }
 0x2bb   :  { %1620 = vmatpush3.bf16.msra.mxu1 %v1864_v10 }
 0x2bc   :  { %1621 = vmatprep.subr.bf16.mxu1 %v2023_v19 }
 0x2bf   :  { %1622 = vmatpush3.bf16.msra.mxu1 %v1865_v11 }
 0x2c0   :  { %1623 = vmatprep.subr.bf16.mxu1 %v2023_v19 }
 0x2c3   :  { %1624 = vmatpush3.bf16.msra.mxu1 %v1866_v12 }
 0x379   :  { %v1594_v13 = vpop.f32.mrb[4].mxu1 }
 0x37a   :  { %v1595_v15 = vpop.f32.mrb[5].mxu1 }
 0x37b   :  { %v1596_v16 = vadd.f32 %v1595_v15, %v1594_v13  ;;  %v1597_v17 = vpop.f32.mrb[6].mxu1 }
 0x37c   :  { %v1598_v18 = vpop.f32.mrb[7].mxu1 }
 0x37d   :  { %v1274_v20 = vadd.f32 %v1596_v16, %v1552_v14 }
 0x37f   :  { %v1279_v21 = vmax.f32 %v1274_v20, 0.0 }
 0x381   :  { %v1280_v22 = vpack.c.bf16 %v1279_v21, %v1279_v21 }
 0x383   :  { %1626 = vmatmul.mubr.bf16.vlgmr.msra.gmra.mrb[8].mxu1 %v1280_v22 }
 0x456   :  { %v1386_v24 = vpop.f32.mrb[8].mxu1 }
 0x457   :  { %v1387_v25 = vadd.f32 %v1569_v23, %v1386_v24  ;;  %v1627_v19 = vpop.f32.mrb[9].mxu1 }
 0x458   :  { %v1389_v26 = vpop.f32.mrb[10].mxu1 }
 0x459   :  { %v1392_v27 = vmax.f32 %v1387_v25, 0.0  ;;  %v1628_v28 = vpop.f32.mrb[11].mxu1 }
 0x45b   :  { %1394 = vrot.lane.b32.xlu0 %v1392_v27, %s2025_s29 }
 0x4cd   :  { %v1395_v29 = vpop.permute.xlu0 %1394 }
 0x4ce   :  { %v1397_v30 = vsub.f32 %v1392_v27, %v1395_v29 }
 0x4d0   :  { %v1398_v31 = vand.u32 2147483647, %v1397_v30  ;;  %vm1404_vm3 = vcmp.ge.f32.partialorder %v1397_v30, 0.0 }
 0x4d2   :  { %v1399_v32 = vsub.f32 0.0, %v1398_v31 }
 0x4d4   :  { %v1400_v33 = vmul.f32 1.442695, %v1399_v32 }
 0x4d6   :  { %1867 = vpow2.f32 %v1400_v33 }
 0x4e0   :  { %v1868_v34 = vpop.eup %1867 }
 0x4e1   :  { %v1402_v35 = vadd.f32 1.0, %v1868_v34  ;;  %v1405_v37 = vsel %vm1404_vm3, %v1868_v34, 1.0 }
 0x4e3   :  { %1869 = vrcp.f32 %v1402_v35 }
 0x4ed   :  { %v1870_v36 = vpop.eup %1869 }
 0x4ee   :  { %v1406_v38 = vmul.f32 %v1870_v36, %v1405_v37 }
 0x4f0   :  { %1409 = vrot.lane.b32.xlu0 %v1406_v38, %s2026_s7  ;;  %v1407_v39 = vsub.f32 1.0, %v1406_v38 }
 0x562   :  { %v1410_v40 = vpop.permute.xlu0 %1409 }
 0x563   :  { %v1413_v41 = vsel %vm1412_vm4, %v1407_v39, %v1410_v40 }
 0x564   :  { %1415 = vst.msk [vmem:[%s2224_s10] sm:$0xff] %vm1414_vm5, %v1413_v41 }
 0x565   :  { %1420 = vsyncpa [#allocation4], 1 }
 0x566   :  { %1421 = vsyncpa [#allocation6], 1 }
 0x567   :  { %1422 = vsyncpa [#allocation9], 1 }
 0x568   :  { %1423 = vsyncpa [#allocation12], 1 }

</bundles_post_ra>
